<compile_context>
chip_gen: v7x
topology: tpu7x:2x2x1
jax: 0.10.0
libtpu: 0.0.40
codegen_flags: <defaults>
</compile_context>

<pallas_src>
import jax
import jax.numpy as jnp
from jax.experimental import pallas as pl
from jax.experimental.pallas import tpu as pltpu

NUM_LAYERS = 3      # num_layers
GINE_EPS = 0.0      # GINEConv default eps
BN_EPS = 1e-5       # BatchNorm1d default eps
LANE = 128          # TPU lane width


def gnn_kernel(src_ref, dst_ref, x_ref, ea_ref,
               we_all_ref, be_all_ref, w_ref, b_ref, out_ref):
    E = src_ref.shape[0]
    N = x_ref.shape[0]
    DP = b_ref.shape[-1]            # lane-padded feature dim

    # Build one-hot gather/scatter operators in-kernel from int32 indices
    # (VPU iota + compare) instead of DMA-ing two O(E*N) f32 matrices from HBM.
    col_ids = jax.lax.broadcasted_iota(jnp.int32, (E, N), 1)
    g = (col_ids == src_ref[...]).astype(jnp.float32)          # [E, N] one-hot(src)
    row_ids = jax.lax.broadcasted_iota(jnp.int32, (N, E), 0)
    s = (row_ids == dst_ref[...]).astype(jnp.float32)          # [N, E] one-hot(dst)^T

    x = x_ref[...]                                             # [N, DP]

    # Edge embeddings are loop-invariant across layers: one fused matmul for all 3 layers.
    e_emb_all = jnp.dot(ea_ref[...], we_all_ref[...],
                        preferred_element_type=jnp.float32) + be_all_ref[...]   # [E, L*DP]

    for l in range(NUM_LAYERS):                                # static, tiny unrolled layer loop
        e_emb = e_emb_all[:, l * DP:(l + 1) * DP]              # [E, DP] (lane-aligned slice)

        # GINEConv message: relu(x[src] + Linear(edge_attr))
        x_src = jnp.dot(g, x, preferred_element_type=jnp.float32)        # [E, DP]
        msg = jnp.maximum(x_src + e_emb, 0.0)
        # sum-aggregate messages onto destination nodes
        aggr = jnp.dot(s, msg, preferred_element_type=jnp.float32)       # [N, DP]
        # GIN update (mlp_layers = 1) with eval-mode BatchNorm folded into w/b; then ReLU.
        upd = (1.0 + GINE_EPS) * x + aggr
        h = jnp.dot(upd, w_ref[l], preferred_element_type=jnp.float32) + b_ref[l]
        x = jnp.maximum(h, 0.0)                                # Dropout = identity in eval

    out_ref[...] = x


def my_gnn_forward(x, edge_index, edge_attr, params):
    N, D = x.shape
    E, De = edge_attr.shape
    L = NUM_LAYERS
    DP = max(LANE, ((D + LANE - 1) // LANE) * LANE)            # lane-dense feature dim

    # --- fold eval-mode BatchNorm into the GIN linear (wrapper-side, plain JAX) ---
    inv_std = jax.lax.rsqrt(params["var"] + BN_EPS)            # [L,1,D]
    scale = params["gamma"] * inv_std                          # [L,1,D]
    w_fold = params["w_t"] * scale                             # [L,D,D] (scale output cols)
    b_fold = (params["b"] - params["mean"]) * scale + params["beta"]   # [L,1,D]

    # --- zero-pad the feature dim to DP (safe: padded cols stay exactly 0 in every layer) ---
    pad = DP - D

    def pad_last(a):
        return jnp.pad(a, [(0, 0)] * (a.ndim - 1) + [(0, pad)])

    x_p = pad_last(x)                                          # [N, DP]
    we_p = pad_last(params["we_t"])                            # [L, De, DP]
    be_p = pad_last(params["be"])                              # [L, 1, DP]
    w_p = jnp.pad(w_fold, ((0, 0), (0, pad), (0, pad)))        # [L, DP, DP]
    b_p = pad_last(b_fold)                                     # [L, 1, DP]

    # --- hoist/fuse the edge linear across layers: [De, L*DP], [1, L*DP] ---
    we_all = jnp.concatenate([we_p[l] for l in range(L)], axis=-1)
    be_all = jnp.concatenate([be_p[l] for l in range(L)], axis=-1)

    src = edge_index[0].astype(jnp.int32).reshape(E, 1)        # [E, 1]
    dst = edge_index[1].astype(jnp.int32).reshape(1, E)        # [1, E]

    flops = 2 * E * De * L * DP + L * (2 * E * N * DP + 2 * N * E * DP + 2 * N * DP * DP)
    bytes_accessed = 4 * (2 * E + N * DP + E * De
                          + De * L * DP + L * DP + L * DP * DP + L * DP + N * DP)

    vmem = pl.BlockSpec(memory_space=pltpu.MemorySpace.VMEM)
    out_p = pl.pallas_call(
        gnn_kernel,
        out_shape=jax.ShapeDtypeStruct((N, DP), jnp.float32),
        in_specs=[vmem] * 8,
        out_specs=vmem,
        cost_estimate=pl.CostEstimate(flops=flops, transcendentals=0,
                                      bytes_accessed=bytes_accessed),
    )(src, dst, x_p, edge_attr, we_all, be_all, w_p, b_p)

    return out_p[:, :D]


def reference(x, edge_index, edge_attr, params):
    """Pure-JAX reference of the same eval-mode forward (unfolded BN, unpadded)."""
    src, dst = edge_index[0], edge_index[1]
    for l in range(NUM_LAYERS):
        e_emb = edge_attr @ params["we_t"][l] + params["be"][l]
        msg = jnp.maximum(x[src] + e_emb, 0.0)
        aggr = jax.ops.segment_sum(msg, dst, num_segments=x.shape[0])
        h = ((1.0 + GINE_EPS) * x + aggr) @ params["w_t"][l] + params["b"][l]
        xn = (h - params["mean"][l]) * jax.lax.rsqrt(params["var"][l] + BN_EPS)
        x = jnp.maximum(params["gamma"][l] * xn + params["beta"][l], 0.0)
    return x


if __name__ == "__main__":
    N, D, De, E = 16, 32, 8, 48   # nodes, node_dim, edge_dim, edges

    key = jax.random.PRNGKey(0)
    ks = jax.random.split(key, 12)

    x = jax.random.normal(ks[0], (N, D), jnp.float32)
    edge_index = jax.random.randint(ks[1], (2, E), 0, N, dtype=jnp.int32)
    edge_attr = jax.random.normal(ks[2], (E, De), jnp.float32)

    # Deterministic synthetic parameters (torch Linear weight is [out, in]; we
    # store the transpose so the kernel does  act @ W^T  as a plain matmul).
    we = 0.1 * jax.random.normal(ks[3], (NUM_LAYERS, D, De), jnp.float32)   # edge Linear(edge_dim -> node_dim)
    be = 0.1 * jax.random.normal(ks[4], (NUM_LAYERS, 1, D), jnp.float32)
    w = 0.1 * jax.random.normal(ks[5], (NUM_LAYERS, D, D), jnp.float32)     # GIN MLP Linear(node_dim -> node_dim)
    b = 0.1 * jax.random.normal(ks[6], (NUM_LAYERS, 1, D), jnp.float32)
    gamma = 1.0 + 0.1 * jax.random.normal(ks[7], (NUM_LAYERS, 1, D), jnp.float32)
    beta = 0.1 * jax.random.normal(ks[8], (NUM_LAYERS, 1, D), jnp.float32)
    mean = 0.1 * jax.random.normal(ks[9], (NUM_LAYERS, 1, D), jnp.float32)
    var = 0.5 + jax.random.uniform(ks[10], (NUM_LAYERS, 1, D), jnp.float32)

    params = dict(
        we_t=jnp.transpose(we, (0, 2, 1)), be=be,
        w_t=jnp.transpose(w, (0, 2, 1)), b=b,
        gamma=gamma, beta=beta, mean=mean, var=var,
    )

    out = my_gnn_forward(x, edge_index, edge_attr, params)
    out = jax.block_until_ready(out)

    ref = reference(x, edge_index, edge_attr, params)
    assert out.shape == (N, D) and out.dtype == jnp.float32
    assert jnp.allclose(out, ref, atol=1e-4, rtol=1e-4), "mismatch vs JAX reference"

    print("KERNEL_OK")
</pallas_src>

<mosaic_0001>
module attributes {stable_mosaic.version = 11 : i64} {
  func.func @gnn_kernel(%arg0: memref<48x1xi32, #tpu.memory_space<vmem>>, %arg1: memref<1x48xi32, #tpu.memory_space<vmem>>, %arg2: memref<16x128xf32, #tpu.memory_space<vmem>>, %arg3: memref<48x8xf32, #tpu.memory_space<vmem>>, %arg4: memref<8x384xf32, #tpu.memory_space<vmem>>, %arg5: memref<1x384xf32, #tpu.memory_space<vmem>>, %arg6: memref<3x128x128xf32, #tpu.memory_space<vmem>>, %arg7: memref<3x1x128xf32, #tpu.memory_space<vmem>>, %arg8: memref<16x128xf32, #tpu.memory_space<vmem>>) attributes {dimension_semantics = [], scalar_prefetch = 0 : i64, scratch_operands = 0 : i64, tpu.core_type = #tpu.core_type<tc>} {
    %0 = tpu.iota {dimensions = array<i32: 1>} : vector<48x16xi32>
    %c0 = arith.constant 0 : index
    %c0_0 = arith.constant 0 : index
    %1 = vector.load %arg0[%c0, %c0_0] : memref<48x1xi32, #tpu.memory_space<vmem>>, vector<48x1xi32>
    %2 = vector.broadcast %1 : vector<48x1xi32> to vector<48x16xi32>
    %3 = arith.cmpi eq, %0, %2 : vector<48x16xi32>
    %4 = arith.extui %3 : vector<48x16xi1> to vector<48x16xi32>
    %5 = arith.sitofp %4 : vector<48x16xi32> to vector<48x16xf32>
    %6 = tpu.iota {dimensions = array<i32: 0>} : vector<16x48xi32>
    %c0_1 = arith.constant 0 : index
    %c0_2 = arith.constant 0 : index
    %7 = vector.load %arg1[%c0_1, %c0_2] : memref<1x48xi32, #tpu.memory_space<vmem>>, vector<1x48xi32>
    %8 = vector.broadcast %7 : vector<1x48xi32> to vector<16x48xi32>
    %9 = arith.cmpi eq, %6, %8 : vector<16x48xi32>
    %10 = arith.extui %9 : vector<16x48xi1> to vector<16x48xi32>
    %11 = arith.sitofp %10 : vector<16x48xi32> to vector<16x48xf32>
    %c0_3 = arith.constant 0 : index
    %c0_4 = arith.constant 0 : index
    %12 = vector.load %arg2[%c0_3, %c0_4] : memref<16x128xf32, #tpu.memory_space<vmem>>, vector<16x128xf32>
    %c0_5 = arith.constant 0 : index
    %c0_6 = arith.constant 0 : index
    %13 = vector.load %arg3[%c0_5, %c0_6] : memref<48x8xf32, #tpu.memory_space<vmem>>, vector<48x8xf32>
    %c0_7 = arith.constant 0 : index
    %c0_8 = arith.constant 0 : index
    %14 = vector.load %arg4[%c0_7, %c0_8] : memref<8x384xf32, #tpu.memory_space<vmem>>, vector<8x384xf32>
    %cst = arith.constant dense<0.000000e+00> : vector<48x384xf32>
    %15 = tpu.matmul %13, %14, %cst {dimension_numbers = #tpu.dot_dimension_numbers<[1], [0], [0], [1], [0, 0, 1, 1], [], []>} : vector<48x8xf32>, vector<8x384xf32>, vector<48x384xf32> -> vector<48x384xf32>
    %c0_9 = arith.constant 0 : index
    %c0_10 = arith.constant 0 : index
    %16 = vector.load %arg5[%c0_9, %c0_10] : memref<1x384xf32, #tpu.memory_space<vmem>>, vector<1x384xf32>
    %17 = vector.broadcast %16 : vector<1x384xf32> to vector<48x384xf32>
    %18 = arith.addf %15, %17 : vector<48x384xf32>
    %19 = vector.extract_strided_slice %18 {offsets = [0, 0], sizes = [48, 128], strides = [1, 1]} : vector<48x384xf32> to vector<48x128xf32>
    %cst_11 = arith.constant dense<0.000000e+00> : vector<48x128xf32>
    %20 = tpu.matmul %5, %12, %cst_11 {dimension_numbers = #tpu.dot_dimension_numbers<[1], [0], [0], [1], [0, 0, 1, 1], [], []>} : vector<48x16xf32>, vector<16x128xf32>, vector<48x128xf32> -> vector<48x128xf32>
    %21 = arith.addf %20, %19 : vector<48x128xf32>
    %cst_12 = arith.constant 0.000000e+00 : f32
    %22 = vector.broadcast %cst_12 : f32 to vector<48x128xf32>
    %23 = arith.maximumf %21, %22 : vector<48x128xf32>
    %cst_13 = arith.constant dense<0.000000e+00> : vector<16x128xf32>
    %24 = tpu.matmul %11, %23, %cst_13 {dimension_numbers = #tpu.dot_dimension_numbers<[1], [0], [0], [1], [0, 0, 1, 1], [], []>} : vector<16x48xf32>, vector<48x128xf32>, vector<16x128xf32> -> vector<16x128xf32>
    %cst_14 = arith.constant 1.000000e+00 : f32
    %25 = vector.broadcast %cst_14 : f32 to vector<16x128xf32>
    %26 = arith.mulf %25, %12 : vector<16x128xf32>
    %27 = arith.addf %26, %24 : vector<16x128xf32>
    %c0_15 = arith.constant 0 : index
    %c0_16 = arith.constant 0 : index
    %c0_17 = arith.constant 0 : index
    %28 = vector.load %arg6[%c0_15, %c0_16, %c0_17] : memref<3x128x128xf32, #tpu.memory_space<vmem>>, vector<1x128x128xf32>
    %29 = vector.shape_cast %28 : vector<1x128x128xf32> to vector<128x128xf32>
    %cst_18 = arith.constant dense<0.000000e+00> : vector<16x128xf32>
    %30 = tpu.matmul %27, %29, %cst_18 {dimension_numbers = #tpu.dot_dimension_numbers<[1], [0], [0], [1], [0, 0, 1, 1], [], []>} : vector<16x128xf32>, vector<128x128xf32>, vector<16x128xf32> -> vector<16x128xf32>
    %c0_19 = arith.constant 0 : index
    %c0_20 = arith.constant 0 : index
    %c0_21 = arith.constant 0 : index
    %31 = vector.load %arg7[%c0_19, %c0_20, %c0_21] : memref<3x1x128xf32, #tpu.memory_space<vmem>>, vector<1x1x128xf32>
    %32 = vector.shape_cast %31 : vector<1x1x128xf32> to vector<1x128xf32>
    %33 = vector.broadcast %32 : vector<1x128xf32> to vector<16x128xf32>
    %34 = arith.addf %30, %33 : vector<16x128xf32>
    %cst_22 = arith.constant 0.000000e+00 : f32
    %35 = vector.broadcast %cst_22 : f32 to vector<16x128xf32>
    %36 = arith.maximumf %34, %35 : vector<16x128xf32>
    %37 = vector.extract_strided_slice %18 {offsets = [0, 128], sizes = [48, 128], strides = [1, 1]} : vector<48x384xf32> to vector<48x128xf32>
    %cst_23 = arith.constant dense<0.000000e+00> : vector<48x128xf32>
    %38 = tpu.matmul %5, %36, %cst_23 {dimension_numbers = #tpu.dot_dimension_numbers<[1], [0], [0], [1], [0, 0, 1, 1], [], []>} : vector<48x16xf32>, vector<16x128xf32>, vector<48x128xf32> -> vector<48x128xf32>
    %39 = arith.addf %38, %37 : vector<48x128xf32>
    %cst_24 = arith.constant 0.000000e+00 : f32
    %40 = vector.broadcast %cst_24 : f32 to vector<48x128xf32>
    %41 = arith.maximumf %39, %40 : vector<48x128xf32>
    %cst_25 = arith.constant dense<0.000000e+00> : vector<16x128xf32>
    %42 = tpu.matmul %11, %41, %cst_25 {dimension_numbers = #tpu.dot_dimension_numbers<[1], [0], [0], [1], [0, 0, 1, 1], [], []>} : vector<16x48xf32>, vector<48x128xf32>, vector<16x128xf32> -> vector<16x128xf32>
    %cst_26 = arith.constant 1.000000e+00 : f32
    %43 = vector.broadcast %cst_26 : f32 to vector<16x128xf32>
    %44 = arith.mulf %43, %36 : vector<16x128xf32>
    %45 = arith.addf %44, %42 : vector<16x128xf32>
    %c1 = arith.constant 1 : index
    %c0_27 = arith.constant 0 : index
    %c0_28 = arith.constant 0 : index
    %46 = vector.load %arg6[%c1, %c0_27, %c0_28] : memref<3x128x128xf32, #tpu.memory_space<vmem>>, vector<1x128x128xf32>
    %47 = vector.shape_cast %46 : vector<1x128x128xf32> to vector<128x128xf32>
    %cst_29 = arith.constant dense<0.000000e+00> : vector<16x128xf32>
    %48 = tpu.matmul %45, %47, %cst_29 {dimension_numbers = #tpu.dot_dimension_numbers<[1], [0], [0], [1], [0, 0, 1, 1], [], []>} : vector<16x128xf32>, vector<128x128xf32>, vector<16x128xf32> -> vector<16x128xf32>
    %c1_30 = arith.constant 1 : index
    %c0_31 = arith.constant 0 : index
    %c0_32 = arith.constant 0 : index
    %49 = vector.load %arg7[%c1_30, %c0_31, %c0_32] : memref<3x1x128xf32, #tpu.memory_space<vmem>>, vector<1x1x128xf32>
    %50 = vector.shape_cast %49 : vector<1x1x128xf32> to vector<1x128xf32>
    %51 = vector.broadcast %50 : vector<1x128xf32> to vector<16x128xf32>
    %52 = arith.addf %48, %51 : vector<16x128xf32>
    %cst_33 = arith.constant 0.000000e+00 : f32
    %53 = vector.broadcast %cst_33 : f32 to vector<16x128xf32>
    %54 = arith.maximumf %52, %53 : vector<16x128xf32>
    %55 = vector.extract_strided_slice %18 {offsets = [0, 256], sizes = [48, 128], strides = [1, 1]} : vector<48x384xf32> to vector<48x128xf32>
    %cst_34 = arith.constant dense<0.000000e+00> : vector<48x128xf32>
    %56 = tpu.matmul %5, %54, %cst_34 {dimension_numbers = #tpu.dot_dimension_numbers<[1], [0], [0], [1], [0, 0, 1, 1], [], []>} : vector<48x16xf32>, vector<16x128xf32>, vector<48x128xf32> -> vector<48x128xf32>
    %57 = arith.addf %56, %55 : vector<48x128xf32>
    %cst_35 = arith.constant 0.000000e+00 : f32
    %58 = vector.broadcast %cst_35 : f32 to vector<48x128xf32>
    %59 = arith.maximumf %57, %58 : vector<48x128xf32>
    %cst_36 = arith.constant dense<0.000000e+00> : vector<16x128xf32>
    %60 = tpu.matmul %11, %59, %cst_36 {dimension_numbers = #tpu.dot_dimension_numbers<[1], [0], [0], [1], [0, 0, 1, 1], [], []>} : vector<16x48xf32>, vector<48x128xf32>, vector<16x128xf32> -> vector<16x128xf32>
    %cst_37 = arith.constant 1.000000e+00 : f32
    %61 = vector.broadcast %cst_37 : f32 to vector<16x128xf32>
    %62 = arith.mulf %61, %54 : vector<16x128xf32>
    %63 = arith.addf %62, %60 : vector<16x128xf32>
    %c2 = arith.constant 2 : index
    %c0_38 = arith.constant 0 : index
    %c0_39 = arith.constant 0 : index
    %64 = vector.load %arg6[%c2, %c0_38, %c0_39] : memref<3x128x128xf32, #tpu.memory_space<vmem>>, vector<1x128x128xf32>
    %65 = vector.shape_cast %64 : vector<1x128x128xf32> to vector<128x128xf32>
    %cst_40 = arith.constant dense<0.000000e+00> : vector<16x128xf32>
    %66 = tpu.matmul %63, %65, %cst_40 {dimension_numbers = #tpu.dot_dimension_numbers<[1], [0], [0], [1], [0, 0, 1, 1], [], []>} : vector<16x128xf32>, vector<128x128xf32>, vector<16x128xf32> -> vector<16x128xf32>
    %c2_41 = arith.constant 2 : index
    %c0_42 = arith.constant 0 : index
    %c0_43 = arith.constant 0 : index
    %67 = vector.load %arg7[%c2_41, %c0_42, %c0_43] : memref<3x1x128xf32, #tpu.memory_space<vmem>>, vector<1x1x128xf32>
    %68 = vector.shape_cast %67 : vector<1x1x128xf32> to vector<1x128xf32>
    %69 = vector.broadcast %68 : vector<1x128xf32> to vector<16x128xf32>
    %70 = arith.addf %66, %69 : vector<16x128xf32>
    %cst_44 = arith.constant 0.000000e+00 : f32
    %71 = vector.broadcast %cst_44 : f32 to vector<16x128xf32>
    %72 = arith.maximumf %70, %71 : vector<16x128xf32>
    %c0_45 = arith.constant 0 : index
    %c0_46 = arith.constant 0 : index
    %73 = vector.load %arg8[%c0_45, %c0_46] : memref<16x128xf32, #tpu.memory_space<vmem>>, vector<16x128xf32>
    tpu.vector_store %arg8[%c0_45, %c0_46], %72 {strides = array<i32>} : memref<16x128xf32, #tpu.memory_space<vmem>>, vector<16x128xf32>,
    return
  }
}

</mosaic_0001>

<bundles_post_ra>
// kernel: tpu_custom_call.1
= control target key start
LH: loop header
LB: loop body
LE: loop exit
PB: predicated region body
PF: predicated region fallthrough
CT: control target
= control target key end

     0   :  { %13 = vsyncpa [#allocation3], 0  ;;  %s2133_s0 = inlined_call_operand.vmem [shape: s32[48,1], index: 0, kind: input, shape index: {}]   ;;  %s2134_s1 = inlined_call_operand.vmem [shape: s32[1,48], index: 1, kind: input, shape index: {}]   ;;  %s2135_s2 = inlined_call_operand.vmem [shape: f32[16,128], index: 2, kind: input, shape index: {}]   ;;  %s2136_s3 = inlined_call_operand.vmem [shape: f32[48,8], index: 3, kind: input, shape index: {}]   ;;  %s2137_s4 = inlined_call_operand.vmem [shape: f32[8,384], index: 4, kind: input, shape index: {}]   ;;  %s2138_s5 = inlined_call_operand.vmem [shape: f32[1,384], index: 5, kind: input, shape index: {}]   ;;  %s2139_s6 = inlined_call_operand.hbm [shape: f32[3,128,128], index: 6, kind: input, shape index: {}]   ;;  %s2140_s7 = inlined_call_operand.vmem [shape: f32[3,1,128], index: 7, kind: input, shape index: {}]   ;;  %s2141_s8 = inlined_call_operand.hbm [shape: f32[16,128], index: 8, kind: output, shape index: {}]  }
   0x1   :  { %14 = vsyncpa [#allocation4], 0  ;;  %s1799_s27 = smov [#allocation2]   ;;  %s1751_s9 = scalar_lea.hbm %s2139_s6, 6144 }
   0x2   :  { %s32_s28 = sshll.u32 %s1799_s27, 4  ;;  %p1752_p0 = scmp.ne.s32.totalorder %s2139_s6, %s1751_s9  ;;  %s33_s28 = int_to_ptr.vmem [resolvable:$true] %s32_s28 }
   0x3   :  { %p1755_p1 = scmp.lt.u32.totalorder %s1751_s9, %s2139_s6 }
   0x5   :  { %p1757_p2 = pnand %p1755_p1, %p1752_p0 }
   0x7   :  { %1760 = shalt.err (!%p1757_p2)
}
   0x8   :  { %s1761_s14 = scalar_lea.vmem %s33_s28, 6144  ;;  %p1766_p4 = scmp.lt.s32.totalorder %s33_s28, %s33_s28 }
   0x9   :  { %p1762_p3 = scmp.ne.s32.totalorder %s33_s28, %s1761_s14  ;;  %p1767_p5 = scmp.lt.s32.totalorder %s1761_s14, %s1761_s14 }
   0xb   :  { %p1768_p6 = por %p1767_p5, %p1766_p4 }
   0xd   :  { %p1769_p7 = pnand %p1768_p6, %p1762_p3 }
   0xf   :  { %1772 = shalt.err (!%p1769_p7)
}
  0x10   :  { %s1800_s15 = smov 128   ;;  %s1801_s16 = smov 8  }
  0x11   :  { %38 = dma.hbm_to_vmem [thread:$0]  %s2139_s6, 6144, %s33_s28, [#allocation3], %s1800_s15, %s1800_s15, %s1801_s16  }
  0x12   :  { %1795 = dma.done.wait [#allocation3], 6144  }
  0x13   :  { %1796 = vsyncadd [#allocation3], 4294961152  ;;  %v1802_v0 = vmov 0   ;;  %v1803_v1 = vmov 0.0   ;;  %v48_v2 = vld [vmem:[%s2133_s0 + $0x10] sm:$0xff]  ;;  %v46_v3 = vld [vmem:[%s2133_s0] sm:$0xff]  ;;  %v44_v20 = vlaneseq }
  0x14   :  { %1750 = vset.pattern.permute.xlu1 %v1802_v0  ;;  %1749 = vset.pattern.permute.xlu0 %v1802_v0  ;;  %v49_v4 = vld [vmem:[%s2133_s0 + $0x18] sm:$0xff]  ;;  %v47_v5 = vld [vmem:[%s2133_s0 + $0x8] sm:$0xff]  ;;  %v110_v7 = vld [vmem:[%s2137_s4] sm:$0xff]  ;;  %vm130_vm0 = vcmask 64512   ;;  %vm345_vm1 = vcmask 130048   ;;  %vm465_vm9 = vcmask 392192  }
  0x15   :  { %213 = vmatprep.mubr.f32.mxu0 %v1803_v1  ;;  %59 = vperm.xlu1 %1750, %v48_v2   ;;  %v111_v6 = vld [vmem:[%s2137_s4 + $0x8] sm:$0xff]  ;;  %v104_v8 = vld [vmem:[%s2136_s3] sm:$0xff]  ;;  %v106_v15 = vld [vmem:[%s2136_s3 + $0x10] sm:$0xff]  ;;  %v45_v21 = vand.u32 127, %v44_v20  ;;  %v1982_v42 = vshrl.u32 %v44_v20, 7  ;;  %s1804_s13 = smov [#allocation5]  }
  0x16   :  { %53 = vperm.xlu0 %1749, %v46_v3   ;;  %149 = vmatprep.subr.mxu0 %v111_v6  ;;  %v1890_v9 = vld [vmem:[%s2135_s2] sm:$0xff]  ;;  %v1895_v10 = vld [vmem:[%s2135_s2 + $0x8] sm:$0xff]  ;;  %v107_v16 = vld [vmem:[%s2136_s3 + $0x18] sm:$0xff]  ;;  %s1216_s14 = sshll.u32 %s1804_s13, 4  ;;  %s1217_s14 = int_to_ptr.vmem [resolvable:$true] %s1216_s14 }
  0x17   :  { %150 = vmatpush1.msra.mxu0 %v110_v7  ;;  %v1587_v11 = vpack.c.bf16 %v1895_v10, %v1890_v9  ;;  %v51_v12 = vld [vmem:[%s2133_s0 + $0x28] sm:$0xff]  ;;  %v50_v13 = vld [vmem:[%s2133_s0 + $0x20] sm:$0xff]  ;;  %v112_v17 = vld [vmem:[%s2137_s4 + $0x10] sm:$0xff]  ;;  %s1773_s17 = scalar_lea.vmem %s1217_s14, 256  ;;  %p1778_p9 = scmp.lt.s32.totalorder %s1217_s14, %s1217_s14 }
  0x18   :  { %1237 = vmatmul.mubr.msk.f32.vlgmr.msra.gmra.mrb[0].mxu0 %vm130_vm0, %v104_v8  ;;  %v105_v14 = vld [vmem:[%s2136_s3 + $0x8] sm:$0xff]  ;;  %1387 = vmatprep.subr.mxu0 %v112_v17  ;;  %v108_v18 = vld [vmem:[%s2136_s3 + $0x20] sm:$0xff]  ;;  %v551_v51 = vld [vmem:[#allocation2 + $0x10] sm:$0xff]  ;;  %p1774_p8 = scmp.ne.s32.totalorder %s1217_s14, %s1773_s17  ;;  %p1779_p10 = scmp.lt.s32.totalorder %s1773_s17, %s1773_s17 }
  0x19   :  { %62 = vperm.xlu1 %1750, %v49_v4   ;;  %219 = vmatprep.mubr.f32.mxu0 %v1803_v1  ;;  %v109_v19 = vld [vmem:[%s2136_s3 + $0x28] sm:$0xff]  ;;  %v1991_v45 = vld [vmem:[%s2134_s1] ss:$0 sm:$0xff]  ;;  %v552_v53 = vld [vmem:[#allocation2 + $0x18] sm:$0xff] }
  0x1a   :  { %56 = vperm.xlu0 %1749, %v47_v5   ;;  %1588 = vmatprep.subr.bf16.mxu1 %v1587_v11  ;;  %vm96_vm8 = vcmp.eq.s32.totalorder %v1982_v42, %v1991_v45  ;;  %v549_v49 = vld [vmem:[#allocation2] sm:$0xff]  ;;  %v550_v50 = vld [vmem:[#allocation2 + $0x8] sm:$0xff]  ;;  %v1607_v54 = vpack.c.bf16 %v552_v53, %v551_v51  ;;  %v555_v60 = vld [vmem:[#allocation2 + $0x30] sm:$0xff]  ;;  %p1780_p11 = por %p1779_p10, %p1778_p9 }
  0x1b   :  { %1590 = vmatpush3.bf16.msra.mxu1 %v1587_v11  ;;  %1388 = vmatpush3.msra.mxu0 %v112_v17  ;;  %v1996_v46 = vsel %vm96_vm8, 1.0, %v1803_v1  ;;  %v1603_v52 = vpack.c.bf16 %v550_v50, %v549_v49  ;;  %v553_v55 = vld [vmem:[#allocation2 + $0x20] sm:$0xff]  ;;  %v554_v56 = vld [vmem:[#allocation2 + $0x28] sm:$0xff]  ;;  %v556_v61 = vld [vmem:[#allocation2 + $0x38] sm:$0xff] }
  0x1c   :  { %1238 = vmatmul.mubr.msk.f32.gmra.mrb[2].mxu0 %vm130_vm0, %v105_v14  ;;  %v1611_v59 = vpack.c.bf16 %v554_v56, %v553_v55  ;;  %v1615_v0 = vpack.c.bf16 %v556_v61, %v555_v60  ;;  %v557_v2 = vld [vmem:[#allocation2 + $0x40] sm:$0xff]  ;;  %v558_v3 = vld [vmem:[#allocation2 + $0x48] sm:$0xff]  ;;  %v559_v7 = vld [vmem:[#allocation2 + $0x50] sm:$0xff]  ;;  %p1781_p12 = pnand %p1780_p11, %p1774_p8 }
  0x1d   :  { %68 = vperm.xlu1 %1750, %v51_v12   ;;  %225 = vmatprep.mubr.f32.mxu0 %v1803_v1  ;;  %v1619_v6 = vpack.c.bf16 %v558_v3, %v557_v2  ;;  %v561_v12 = vld [vmem:[#allocation2 + $0x60] sm:$0xff]  ;;  %v563_v3 = vld [vmem:[#allocation2 + $0x70] sm:$0xff] }
  0x1e   :  { %65 = vperm.xlu0 %1749, %v50_v13   ;;  %1604 = vmatprep.subr.bf16.mxu1 %v1603_v52  ;;  %v562_v13 = vld [vmem:[#allocation2 + $0x68] sm:$0xff] }
  0x20   :  { %1239 = vmatmul.mubr.msk.f32.gmra.mrb[4].mxu0 %vm130_vm0, %v106_v15 }
  0x21   :  { %231 = vmatprep.mubr.f32.mxu0 %v1803_v1 }
  0x24   :  { %1240 = vmatmul.mubr.msk.f32.gmra.mrb[6].mxu0 %vm130_vm0, %v107_v16 }
  0x25   :  { %237 = vmatprep.mubr.f32.mxu0 %v1803_v1 }
  0x28   :  { %1241 = vmatmul.mubr.msk.f32.gmra.mrb[8].mxu0 %vm130_vm0, %v108_v18 }
  0x29   :  { %243 = vmatprep.mubr.f32.mxu0 %v1803_v1 }
  0x2c   :  { %1242 = vmatmul.mubr.msk.f32.gmra.mrb[10].mxu0 %vm130_vm0, %v109_v19 }
  0x2d   :  { %1389 = vmatprep.mubr.msk.f32.mxu0 %vm130_vm0, %v104_v8  ;;  %v560_v8 = vld [vmem:[#allocation2 + $0x58] sm:$0xff] }
  0x2e   :  { %v1623_v11 = vpack.c.bf16 %v560_v8, %v559_v7 }
  0x30   :  { %1390 = vmatmul.mubr.msk.f32.vlgmr.msra.gmra.mrb[12].mxu0 %vm130_vm0, %v105_v14  ;;  %v1627_v14 = vpack.c.bf16 %v562_v13, %v561_v12 }
  0x31   :  { %1392 = vmatprep.mubr.msk.f32.mxu0 %vm130_vm0, %v106_v15  ;;  %v117_v15 = vsub.s32 0, %v1982_v42 }
  0x34   :  { %1393 = vmatmul.mubr.msk.f32.gmra.mrb[14].mxu0 %vm130_vm0, %v107_v16  ;;  %v2018_v16 = vld [vmem:[%s2138_s5] sm:$0x7] }
  0x35   :  { %1395 = vmatprep.mubr.msk.f32.mxu0 %vm130_vm0, %v108_v18  ;;  %v118_v17 = vrot.slane %v2018_v16, %v117_v15 }
  0x38   :  { %1396 = vmatmul.mubr.msk.f32.gmra.mrb[16].mxu0 %vm130_vm0, %v109_v19 }
  0x39   :  { %1423 = vmatprep.mubr.msk.f32.mxu0 %vm465_vm9, %v1996_v46 }
  0x94   :  { %v60_v22 = vpop.permute.xlu1 %59 }
  0x95   :  { %v54_v23 = vpop.permute.xlu0 %53  ;;  %vm72_vm3 = vcmp.eq.s32.totalorder %v45_v21, %v60_v22 }
  0x96   :  { %vm70_vm2 = vcmp.eq.s32.totalorder %v45_v21, %v54_v23  ;;  %v1946_v27 = vsel %vm72_vm3, 1.0, %v1803_v1 }
  0x97   :  { %v1941_v24 = vsel %vm70_vm2, 1.0, %v1803_v1 }
  0x98   :  { %1402 = vmatprep.mubr.msk.f32.mxu1 %vm345_vm1, %v1941_v24  ;;  %v63_v25 = vpop.permute.xlu1 %62 }
  0x99   :  { %v57_v26 = vpop.permute.xlu0 %56  ;;  %vm73_vm5 = vcmp.eq.s32.totalorder %v45_v21, %v63_v25 }
  0x9a   :  { %vm71_vm4 = vcmp.eq.s32.totalorder %v45_v21, %v57_v26  ;;  %v1956_v31 = vsel %vm73_vm5, 1.0, %v1803_v1 }
  0x9b   :  { %v1949_v28 = vsel %vm71_vm4, 1.0, %v1803_v1 }
  0x9c   :  { %1403 = vmatmul.mubr.msk.f32.vlgmr.msra.gmra.mrb[0].mxu1 %vm345_vm1, %v1949_v28  ;;  %v69_v29 = vpop.permute.xlu1 %68 }
  0x9d   :  { %1405 = vmatprep.mubr.msk.f32.mxu1 %vm345_vm1, %v1946_v27  ;;  %v66_v30 = vpop.permute.xlu0 %65  ;;  %vm75_vm7 = vcmp.eq.s32.totalorder %v45_v21, %v69_v29  ;;  %1606 = vmatpush3.bf16.msra.mxu1 %v1603_v52 }
  0x9e   :  { %vm74_vm6 = vcmp.eq.s32.totalorder %v45_v21, %v66_v30  ;;  %v1966_v33 = vsel %vm75_vm7, 1.0, %v1803_v1  ;;  %1608 = vmatprep.subr.bf16.mxu1 %v1607_v54 }
  0x9f   :  { %v1959_v32 = vsel %vm74_vm6, 1.0, %v1803_v1 }
  0xa0   :  { %1406 = vmatmul.mubr.msk.f32.gmra.mrb[2].mxu1 %vm345_vm1, %v1956_v31 }
  0xa1   :  { %1408 = vmatprep.mubr.msk.f32.mxu1 %vm345_vm1, %v1959_v32  ;;  %1610 = vmatpush3.bf16.msra.mxu1 %v1607_v54 }
  0xa2   :  { %1612 = vmatprep.subr.bf16.mxu1 %v1611_v59 }
  0xa4   :  { %1409 = vmatmul.mubr.msk.f32.gmra.mrb[4].mxu1 %vm345_vm1, %v1966_v33 }
  0xa5   :  { %1614 = vmatpush3.bf16.msra.mxu1 %v1611_v59 }
  0xa6   :  { %1616 = vmatprep.subr.bf16.mxu1 %v1615_v0 }
  0xa9   :  { %1618 = vmatpush3.bf16.msra.mxu1 %v1615_v0 }
  0xaa   :  { %1620 = vmatprep.subr.bf16.mxu1 %v1619_v6 }
  0xad   :  { %1622 = vmatpush3.bf16.msra.mxu1 %v1619_v6  ;;  %v564_v6 = vld [vmem:[#allocation2 + $0x78] sm:$0xff] }
  0xae   :  { %1624 = vmatprep.subr.bf16.mxu1 %v1623_v11  ;;  %v1631_v7 = vpack.c.bf16 %v564_v6, %v563_v3  ;;  %v831_v3 = vld [vmem:[#allocation2 + $0x98] sm:$0xff]  ;;  %v832_v6 = vld [vmem:[#allocation2 + $0xa0] sm:$0xff] }
  0xb1   :  { %1626 = vmatpush3.bf16.msra.mxu1 %v1623_v11 }
  0xb2   :  { %1628 = vmatprep.subr.bf16.mxu1 %v1627_v14 }
  0xb5   :  { %1630 = vmatpush3.bf16.msra.mxu1 %v1627_v14 }
  0xb6   :  { %1632 = vmatprep.subr.bf16.mxu1 %v1631_v7 }
  0xb9   :  { %1634 = vmatpush3.bf16.msra.mxu1 %v1631_v7  ;;  %v833_v7 = vld [vmem:[#allocation2 + $0xa8] sm:$0xff] }
  0xeb   :  { %v1970_v34 = vpop.f32.mrb[0].mxu0 }
  0xec   :  { %v1972_v35 = vpop.f32.mrb[1].mxu0  ;;  %v216_v19 = vadd.f32 %v1970_v34, %v118_v17 }
  0xef   :  { %v221_v36 = vpop.f32.mrb[2].mxu0 }
  0xf0   :  { %v1974_v37 = vpop.f32.mrb[3].mxu0  ;;  %v222_v18 = vadd.f32 %v221_v36, %v118_v17 }
  0xf3   :  { %v1976_v38 = vpop.f32.mrb[4].mxu0 }
  0xf4   :  { %v1978_v39 = vpop.f32.mrb[5].mxu0  ;;  %v228_v29 = vadd.f32 %v1976_v38, %v118_v17  ;;  %v90_v38 = vadd.s32 8, %v1982_v42 }
  0xf6   :  { %vm97_vm10 = vcmp.eq.s32.totalorder %v90_v38, %v1991_v45  ;;  %v829_v38 = vld [vmem:[#allocation2 + $0x88] sm:$0xff] }
  0xf7   :  { %v233_v40 = vpop.f32.mrb[6].mxu0 }
  0xf8   :  { %v1980_v41 = vpop.f32.mrb[7].mxu0  ;;  %v234_v25 = vadd.f32 %v233_v40, %v118_v17 }
  0xfb   :  { %v1984_v43 = vpop.f32.mrb[8].mxu0 }
  0xfc   :  { %v1986_v44 = vpop.f32.mrb[9].mxu0  ;;  %v240_v36 = vadd.f32 %v1984_v43, %v118_v17  ;;  %v2027_v43 = vsel %vm97_vm10, 1.0, %v1803_v1  ;;  %v1257_v1 = vld [vmem:[%s2140_s7] ss:$0 sm:$0xff] }
  0xff   :  { %v245_v47 = vpop.f32.mrb[10].mxu0 }
 0x100   :  { %v2000_v48 = vpop.f32.mrb[11].mxu0  ;;  %v246_v52 = vadd.f32 %v245_v47, %v118_v17 }
 0x103   :  { %v2002_v57 = vpop.f32.mrb[12].mxu0 }
 0x104   :  { %v2004_v58 = vpop.f32.mrb[13].mxu0 }
 0x107   :  { %v2006_v62 = vpop.f32.mrb[14].mxu0 }
 0x108   :  { %v2008_v63 = vpop.f32.mrb[15].mxu0 }
 0x10b   :  { %v2010_v4 = vpop.f32.mrb[16].mxu0 }
 0x10c   :  { %v2012_v5 = vpop.f32.mrb[17].mxu0 }
 0x16f   :  { %v1404_v20 = vpop.f32.mrb[0].mxu1 }
 0x170   :  { %v436_v21 = vadd.f32 %v1404_v20, %v222_v18  ;;  %v430_v22 = vpop.f32.mrb[1].mxu1 }
 0x171   :  { %v431_v23 = vadd.f32 %v430_v22, %v216_v19 }
 0x172   :  { %v460_v26 = vmax.f32 %v436_v21, 0.0 }
 0x173   :  { %v459_v30 = vmax.f32 %v431_v23, 0.0  ;;  %v1407_v49 = vpop.f32.mrb[2].mxu1 }
 0x174   :  { %v446_v50 = vadd.f32 %v1407_v49, %v234_v25  ;;  %v440_v51 = vpop.f32.mrb[3].mxu1 }
 0x175   :  { %v1591_v53 = vpack.c.bf16 %v460_v26, %v459_v30  ;;  %v441_v54 = vadd.f32 %v440_v51, %v228_v29 }
 0x176   :  { %v462_v55 = vmax.f32 %v446_v50, 0.0 }
 0x177   :  { %v461_v56 = vmax.f32 %v441_v54, 0.0  ;;  %v1410_v34 = vpop.f32.mrb[4].mxu1  ;;  %1592 = vmatprep.subr.bf16.mxu0 %v1591_v53 }
 0x178   :  { %v456_v59 = vadd.f32 %v1410_v34, %v246_v52  ;;  %v450_v60 = vpop.f32.mrb[5].mxu1  ;;  %1594 = vmatpush3.bf16.msra.mxu0 %v1591_v53 }
 0x179   :  { %v1595_v40 = vpack.c.bf16 %v462_v55, %v461_v56  ;;  %v451_v61 = vadd.f32 %v450_v60, %v240_v36 }
 0x17a   :  { %v464_v0 = vmax.f32 %v456_v59, 0.0 }
 0x17b   :  { %v463_v2 = vmax.f32 %v451_v61, 0.0  ;;  %1596 = vmatprep.subr.bf16.mxu0 %v1595_v40  ;;  %v828_v61 = vld [vmem:[#allocation2 + $0x80] sm:$0xff] }
 0x17c   :  { %1598 = vmatpush3.bf16.msra.mxu0 %v1595_v40 }
 0x17d   :  { %v1599_v47 = vpack.c.bf16 %v464_v0, %v463_v2 }
 0x17f   :  { %1600 = vmatprep.subr.bf16.mxu0 %v1599_v47 }
 0x180   :  { %1602 = vmatpush3.bf16.msra.mxu0 %v1599_v47  ;;  %v1651_v47 = vpack.c.bf16 %v829_v38, %v828_v61 }
 0x183   :  { %1424 = vmatmul.mubr.msk.f32.vlgmr.msra.gmra.mrb[18].mxu0 %vm465_vm9, %v2027_v43 }
 0x184   :  { %1465 = vmatprep.mubr.msk.f32.mxu0 %vm345_vm1, %v1941_v24 }
 0x256   :  { %v1425_v8 = vpop.f32.mrb[18].mxu0 }
 0x257   :  { %v538_v11 = vpop.f32.mrb[19].mxu0  ;;  %v548_v12 = vadd.f32 %v1425_v8, %v1895_v10  ;;  %v1659_v8 = vpack.c.bf16 %v833_v7, %v832_v6  ;;  %v1111_v7 = vld [vmem:[#allocation2 + $0x118] sm:$0xff] }
 0x258   :  { %v547_v45 = vadd.f32 %v538_v11, %v1890_v9  ;;  %v834_v11 = vld [vmem:[#allocation2 + $0xb0] sm:$0xff] }
 0x25a   :  { %1458 = vmatprep.mubr.f32.mxu1 %v547_v45  ;;  %v835_v45 = vld [vmem:[#allocation2 + $0xb8] sm:$0xff] }
 0x25b   :  { %1459 = vmatmul.mubr.f32.vlgmr.msra.gmra.mrb[6].mxu1 %v548_v12  ;;  %v1663_v12 = vpack.c.bf16 %v835_v45, %v834_v11  ;;  %v1113_v11 = vld [vmem:[#allocation2 + $0x128] sm:$0xff] }
 0x25c   :  { %1528 = vmatprep.mubr.msk.f32.mxu1 %vm345_vm1, %v1941_v24  ;;  %v121_v24 = vsub.s32 1, %v1982_v42 }
 0x25e   :  { %v122_v19 = vrot.slane %v2018_v16, %v121_v24  ;;  %v839_v24 = vld [vmem:[#allocation2 + $0xd8] sm:$0xff] }
 0x260   :  { %v224_v20 = vadd.f32 %v1974_v37, %v122_v19  ;;  %v218_v21 = vadd.f32 %v1972_v35, %v122_v19  ;;  %v236_v29 = vadd.f32 %v1980_v41, %v122_v19  ;;  %v230_v49 = vadd.f32 %v1978_v39, %v122_v19 }
 0x261   :  { %v248_v36 = vadd.f32 %v2000_v48, %v122_v19  ;;  %v242_v35 = vadd.f32 %v1986_v44, %v122_v19  ;;  %v830_v48 = vld [vmem:[#allocation2 + $0x90] sm:$0xff] }
 0x262   :  { %v1655_v44 = vpack.c.bf16 %v831_v3, %v830_v48  ;;  %v1109_v48 = vld [vmem:[#allocation2 + $0x108] sm:$0xff] }
 0x32e   :  { %v1460_v13 = vpop.f32.mrb[6].mxu1 }
 0x32f   :  { %v2040_v14 = vadd.f32 %v1460_v13, %v1257_v1  ;;  %v638_v15 = vpop.f32.mrb[7].mxu1  ;;  %v837_v13 = vld [vmem:[#allocation2 + $0xc8] sm:$0xff] }
 0x330   :  { %v2042_v17 = vadd.f32 %v1257_v1, %v638_v15  ;;  %v836_v1 = vld [vmem:[#allocation2 + $0xc0] sm:$0xff] }
 0x331   :  { %v648_v18 = vmax.f32 %v2040_v14, 0.0  ;;  %v1667_v15 = vpack.c.bf16 %v837_v13, %v836_v1  ;;  %v1115_v1 = vld [vmem:[#allocation2 + $0x138] sm:$0xff] }
 0x332   :  { %v647_v9 = vmax.f32 %v2042_v17, 0.0 }
 0x334   :  { %v1635_v10 = vpack.c.bf16 %v648_v18, %v647_v9 }
 0x336   :  { %1636 = vmatprep.subr.bf16.mxu0 %v1635_v10 }
 0x337   :  { %1638 = vmatpush3.bf16.msra.mxu0 %v1635_v10  ;;  %v838_v10 = vld [vmem:[#allocation2 + $0xd0] sm:$0xff] }
 0x338   :  { %v1671_v19 = vpack.c.bf16 %v839_v24, %v838_v10  ;;  %v1117_v10 = vld [vmem:[#allocation2 + $0x148] sm:$0xff] }
 0x33a   :  { %1466 = vmatmul.mubr.msk.f32.vlgmr.msra.gmra.mrb[20].mxu0 %vm345_vm1, %v1949_v28 }
 0x33b   :  { %1468 = vmatprep.mubr.msk.f32.mxu0 %vm345_vm1, %v1946_v27 }
 0x33e   :  { %1469 = vmatmul.mubr.msk.f32.gmra.mrb[22].mxu0 %vm345_vm1, %v1956_v31 }
 0x33f   :  { %1471 = vmatprep.mubr.msk.f32.mxu0 %vm345_vm1, %v1959_v32 }
 0x342   :  { %1472 = vmatmul.mubr.msk.f32.gmra.mrb[24].mxu0 %vm345_vm1, %v1966_v33 }
 0x343   :  { %1486 = vmatprep.mubr.msk.f32.mxu0 %vm465_vm9, %v1996_v46 }
 0x40d   :  { %v1467_v22 = vpop.f32.mrb[20].mxu0 }
 0x40e   :  { %v721_v23 = vadd.f32 %v1467_v22, %v224_v20  ;;  %v715_v25 = vpop.f32.mrb[21].mxu0  ;;  %v840_v20 = vld [vmem:[#allocation2 + $0xe0] sm:$0xff] }
 0x40f   :  { %v716_v26 = vadd.f32 %v715_v25, %v218_v21  ;;  %v841_v21 = vld [vmem:[#allocation2 + $0xe8] sm:$0xff]  ;;  %v843_v25 = vld [vmem:[#allocation2 + $0xf8] sm:$0xff] }
 0x410   :  { %v745_v30 = vmax.f32 %v721_v23, 0.0  ;;  %v1675_v22 = vpack.c.bf16 %v841_v21, %v840_v20  ;;  %v842_v23 = vld [vmem:[#allocation2 + $0xf0] sm:$0xff]  ;;  %v1119_v20 = vld [vmem:[#allocation2 + $0x158] sm:$0xff] }
 0x411   :  { %v744_v50 = vmax.f32 %v716_v26, 0.0  ;;  %v1470_v51 = vpop.f32.mrb[22].mxu0  ;;  %v1679_v26 = vpack.c.bf16 %v843_v25, %v842_v23  ;;  %v1122_v25 = vld [vmem:[#allocation2 + $0x170] sm:$0xff] }
 0x412   :  { %v731_v52 = vadd.f32 %v1470_v51, %v236_v29  ;;  %v725_v53 = vpop.f32.mrb[23].mxu0  ;;  %v1267_v51 = vld [vmem:[%s2140_s7 + $0x1] ss:$0 sm:$0xff] }
 0x413   :  { %v1639_v54 = vpack.c.bf16 %v745_v30, %v744_v50  ;;  %v726_v55 = vadd.f32 %v725_v53, %v230_v49 }
 0x414   :  { %v747_v37 = vmax.f32 %v731_v52, 0.0 }
 0x415   :  { %v746_v56 = vmax.f32 %v726_v55, 0.0  ;;  %v1473_v34 = vpop.f32.mrb[24].mxu0  ;;  %1640 = vmatprep.subr.bf16.mxu0 %v1639_v54 }
 0x416   :  { %v741_v59 = vadd.f32 %v1473_v34, %v248_v36  ;;  %v735_v60 = vpop.f32.mrb[25].mxu0  ;;  %1642 = vmatpush3.bf16.msra.mxu0 %v1639_v54 }
 0x417   :  { %v1643_v41 = vpack.c.bf16 %v747_v37, %v746_v56  ;;  %v736_v40 = vadd.f32 %v735_v60, %v242_v35 }
 0x418   :  { %v749_v39 = vmax.f32 %v741_v59, 0.0 }
 0x419   :  { %v748_v0 = vmax.f32 %v736_v40, 0.0  ;;  %1644 = vmatprep.subr.bf16.mxu0 %v1643_v41 }
 0x41a   :  { %1646 = vmatpush3.bf16.msra.mxu0 %v1643_v41 }
 0x41b   :  { %v1647_v2 = vpack.c.bf16 %v749_v39, %v748_v0 }
 0x41d   :  { %1648 = vmatprep.subr.bf16.mxu0 %v1647_v2 }
 0x41e   :  { %1650 = vmatpush3.bf16.msra.mxu0 %v1647_v2 }
 0x41f   :  { %1652 = vmatprep.subr.bf16.mxu0 %v1651_v47 }
 0x421   :  { %1487 = vmatmul.mubr.msk.f32.vlgmr.msra.gmra.mrb[26].mxu0 %vm465_vm9, %v2027_v43 }
 0x422   :  { %1654 = vmatpush3.bf16.msra.mxu0 %v1651_v47  ;;  %v1108_v47 = vld [vmem:[#allocation2 + $0x100] sm:$0xff] }
 0x423   :  { %1656 = vmatprep.subr.bf16.mxu0 %v1655_v44  ;;  %v1699_v6 = vpack.c.bf16 %v1109_v48, %v1108_v47 }
 0x426   :  { %1658 = vmatpush3.bf16.msra.mxu0 %v1655_v44 }
 0x427   :  { %1660 = vmatprep.subr.bf16.mxu0 %v1659_v8 }
 0x42a   :  { %1662 = vmatpush3.bf16.msra.mxu0 %v1659_v8  ;;  %v1112_v8 = vld [vmem:[#allocation2 + $0x120] sm:$0xff] }
 0x42b   :  { %1664 = vmatprep.subr.bf16.mxu0 %v1663_v12  ;;  %v1707_v45 = vpack.c.bf16 %v1113_v11, %v1112_v8 }
 0x42e   :  { %1666 = vmatpush3.bf16.msra.mxu0 %v1663_v12  ;;  %v1114_v12 = vld [vmem:[#allocation2 + $0x130] sm:$0xff] }
 0x42f   :  { %1668 = vmatprep.subr.bf16.mxu0 %v1667_v15  ;;  %v1711_v13 = vpack.c.bf16 %v1115_v1, %v1114_v12 }
 0x432   :  { %1670 = vmatpush3.bf16.msra.mxu0 %v1667_v15  ;;  %v1116_v15 = vld [vmem:[#allocation2 + $0x140] sm:$0xff] }
 0x433   :  { %1672 = vmatprep.subr.bf16.mxu0 %v1671_v19  ;;  %v1715_v24 = vpack.c.bf16 %v1117_v10, %v1116_v15 }
 0x436   :  { %1674 = vmatpush3.bf16.msra.mxu0 %v1671_v19  ;;  %v1118_v19 = vld [vmem:[#allocation2 + $0x150] sm:$0xff] }
 0x437   :  { %1676 = vmatprep.subr.bf16.mxu0 %v1675_v22  ;;  %v1719_v21 = vpack.c.bf16 %v1119_v20, %v1118_v19 }
 0x43a   :  { %1678 = vmatpush3.bf16.msra.mxu0 %v1675_v22  ;;  %v1120_v22 = vld [vmem:[#allocation2 + $0x160] sm:$0xff] }
 0x43b   :  { %1680 = vmatprep.subr.bf16.mxu0 %v1679_v26 }
 0x43e   :  { %1682 = vmatpush3.bf16.msra.mxu0 %v1679_v26  ;;  %v1123_v26 = vld [vmem:[#allocation2 + $0x178] sm:$0xff] }
 0x4f4   :  { %v1488_v29 = vpop.f32.mrb[26].mxu0 }
 0x4f5   :  { %v816_v30 = vpop.f32.mrb[27].mxu0  ;;  %v826_v50 = vadd.f32 %v1488_v29, %v648_v18  ;;  %v125_v18 = vsub.s32 2, %v1982_v42  ;;  %v1727_v29 = vpack.c.bf16 %v1123_v26, %v1122_v25 }
 0x4f6   :  { %v825_v49 = vadd.f32 %v816_v30, %v647_v9 }
 0x4f7   :  { %v126_v9 = vrot.slane %v2018_v16, %v125_v18 }
 0x4f8   :  { %1521 = vmatprep.mubr.f32.mxu0 %v825_v49 }
 0x4f9   :  { %1522 = vmatmul.mubr.f32.vlgmr.msra.gmra.mrb[28].mxu0 %v826_v50  ;;  %v342_v16 = vadd.f32 %v2010_v4, %v126_v9  ;;  %v1110_v4 = vld [vmem:[#allocation2 + $0x110] sm:$0xff] }
 0x5cc   :  { %v1523_v52 = vpop.f32.mrb[28].mxu0 }
 0x5cd   :  { %v2079_v53 = vadd.f32 %v1523_v52, %v1267_v51  ;;  %v918_v54 = vpop.f32.mrb[29].mxu0  ;;  %v1277_v52 = vld [vmem:[%s2140_s7 + $0x2] ss:$0 sm:$0xff] }
 0x5ce   :  { %v2081_v55 = vadd.f32 %v1267_v51, %v918_v54 }
 0x5cf   :  { %v928_v36 = vmax.f32 %v2079_v53, 0.0 }
 0x5d0   :  { %v927_v17 = vmax.f32 %v2081_v55, 0.0 }
 0x5d2   :  { %v1683_v14 = vpack.c.bf16 %v928_v36, %v927_v17 }
 0x5d4   :  { %1684 = vmatprep.subr.bf16.mxu1 %v1683_v14 }
 0x5d5   :  { %1686 = vmatpush3.bf16.msra.mxu1 %v1683_v14 }
 0x5d8   :  { %1529 = vmatmul.mubr.msk.f32.vlgmr.msra.gmra.mrb[8].mxu1 %vm345_vm1, %v1949_v28  ;;  %v322_v28 = vadd.f32 %v2002_v57, %v126_v9 }
 0x5d9   :  { %1531 = vmatprep.mubr.msk.f32.mxu1 %vm345_vm1, %v1946_v27  ;;  %v317_v27 = vadd.f32 %v2004_v58, %v126_v9  ;;  %v337_v58 = vadd.f32 %v2012_v5, %v126_v9  ;;  %v1703_v5 = vpack.c.bf16 %v1111_v7, %v1110_v4 }
 0x5dc   :  { %1532 = vmatmul.mubr.msk.f32.gmra.mrb[10].mxu1 %vm345_vm1, %v1956_v31 }
 0x5dd   :  { %1534 = vmatprep.mubr.msk.f32.mxu1 %vm345_vm1, %v1959_v32  ;;  %v332_v32 = vadd.f32 %v2006_v62, %v126_v9 }
 0x5e0   :  { %1535 = vmatmul.mubr.msk.f32.gmra.mrb[12].mxu1 %vm345_vm1, %v1966_v33  ;;  %v327_v33 = vadd.f32 %v2008_v63, %v126_v9 }
 0x5e1   :  { %1549 = vmatprep.mubr.msk.f32.mxu1 %vm465_vm9, %v1996_v46 }
 0x6ab   :  { %v1530_v37 = vpop.f32.mrb[8].mxu1 }
 0x6ac   :  { %v1001_v35 = vadd.f32 %v1530_v37, %v322_v28  ;;  %v995_v31 = vpop.f32.mrb[9].mxu1 }
 0x6ad   :  { %v996_v56 = vadd.f32 %v995_v31, %v317_v27 }
 0x6ae   :  { %v1025_v34 = vmax.f32 %v1001_v35, 0.0 }
 0x6af   :  { %v1024_v59 = vmax.f32 %v996_v56, 0.0  ;;  %v1533_v60 = vpop.f32.mrb[10].mxu1 }
 0x6b0   :  { %v1011_v46 = vadd.f32 %v1533_v60, %v332_v32  ;;  %v1005_v41 = vpop.f32.mrb[11].mxu1 }
 0x6b1   :  { %v1687_v42 = vpack.c.bf16 %v1025_v34, %v1024_v59  ;;  %v1006_v40 = vadd.f32 %v1005_v41, %v327_v33 }
 0x6b2   :  { %v1027_v57 = vmax.f32 %v1011_v46, 0.0 }
 0x6b3   :  { %v1026_v39 = vmax.f32 %v1006_v40, 0.0  ;;  %v1536_v61 = vpop.f32.mrb[12].mxu1  ;;  %1688 = vmatprep.subr.bf16.mxu1 %v1687_v42 }
 0x6b4   :  { %v1021_v38 = vadd.f32 %v1536_v61, %v342_v16  ;;  %v1015_v0 = vpop.f32.mrb[13].mxu1  ;;  %1690 = vmatpush3.bf16.msra.mxu1 %v1687_v42 }
 0x6b5   :  { %v1691_v62 = vpack.c.bf16 %v1027_v57, %v1026_v39  ;;  %v1016_v2 = vadd.f32 %v1015_v0, %v337_v58 }
 0x6b6   :  { %v1029_v63 = vmax.f32 %v1021_v38, 0.0 }
 0x6b7   :  { %v1028_v3 = vmax.f32 %v1016_v2, 0.0  ;;  %1692 = vmatprep.subr.bf16.mxu1 %v1691_v62 }
 0x6b8   :  { %1694 = vmatpush3.bf16.msra.mxu1 %v1691_v62 }
 0x6b9   :  { %v1695_v44 = vpack.c.bf16 %v1029_v63, %v1028_v3 }
 0x6bb   :  { %1696 = vmatprep.subr.bf16.mxu1 %v1695_v44 }
 0x6bc   :  { %1698 = vmatpush3.bf16.msra.mxu1 %v1695_v44 }
 0x6bd   :  { %1700 = vmatprep.subr.bf16.mxu1 %v1699_v6 }
 0x6bf   :  { %1550 = vmatmul.mubr.msk.f32.vlgmr.msra.gmra.mrb[14].mxu1 %vm465_vm9, %v2027_v43  ;;  %v1121_v43 = vld [vmem:[#allocation2 + $0x168] sm:$0xff] }
 0x6c0   :  { %1702 = vmatpush3.bf16.msra.mxu1 %v1699_v6  ;;  %v1723_v23 = vpack.c.bf16 %v1121_v43, %v1120_v22 }
 0x6c1   :  { %1704 = vmatprep.subr.bf16.mxu1 %v1703_v5 }
 0x6c4   :  { %1706 = vmatpush3.bf16.msra.mxu1 %v1703_v5 }
 0x6c5   :  { %1708 = vmatprep.subr.bf16.mxu1 %v1707_v45 }
 0x6c8   :  { %1710 = vmatpush3.bf16.msra.mxu1 %v1707_v45 }
 0x6c9   :  { %1712 = vmatprep.subr.bf16.mxu1 %v1711_v13 }
 0x6cc   :  { %1714 = vmatpush3.bf16.msra.mxu1 %v1711_v13 }
 0x6cd   :  { %1716 = vmatprep.subr.bf16.mxu1 %v1715_v24 }
 0x6d0   :  { %1718 = vmatpush3.bf16.msra.mxu1 %v1715_v24 }
 0x6d1   :  { %1720 = vmatprep.subr.bf16.mxu1 %v1719_v21 }
 0x6d4   :  { %1722 = vmatpush3.bf16.msra.mxu1 %v1719_v21 }
 0x6d5   :  { %1724 = vmatprep.subr.bf16.mxu1 %v1723_v23 }
 0x6d8   :  { %1726 = vmatpush3.bf16.msra.mxu1 %v1723_v23 }
 0x6d9   :  { %1728 = vmatprep.subr.bf16.mxu1 %v1727_v29 }
 0x6dc   :  { %1730 = vmatpush3.bf16.msra.mxu1 %v1727_v29 }
 0x792   :  { %v1551_v30 = vpop.f32.mrb[14].mxu1 }
 0x793   :  { %v1096_v49 = vpop.f32.mrb[15].mxu1  ;;  %v1106_v51 = vadd.f32 %v1551_v30, %v928_v36 }
 0x794   :  { %v1105_v50 = vadd.f32 %v1096_v49, %v927_v17 }
 0x796   :  { %1584 = vmatprep.mubr.f32.mxu1 %v1105_v50 }
 0x797   :  { %1585 = vmatmul.mubr.f32.vlgmr.msra.gmra.mrb[16].mxu1 %v1106_v51 }
 0x86a   :  { %v1586_v54 = vpop.f32.mrb[16].mxu1 }
 0x86b   :  { %v1204_v14 = vadd.f32 %v1586_v54, %v1277_v52  ;;  %v1198_v18 = vpop.f32.mrb[17].mxu1 }
 0x86c   :  { %v1199_v9 = vadd.f32 %v1277_v52, %v1198_v18 }
 0x86d   :  { %v1208_v28 = vmax.f32 %v1204_v14, 0.0 }
 0x86e   :  { %v1207_v27 = vmax.f32 %v1199_v9, 0.0 }
 0x86f   :  { %1210 = vst [vmem:[#allocation5 + $0x8] sm:$0xff] %v1208_v28 }
 0x870   :  { %1209 = vst [vmem:[#allocation5] sm:$0xff] %v1207_v27 }
 0x871   :  { %1784 = shalt.err (!%p1781_p12)
}
 0x872   :  { %s1785_s19 = scalar_lea.hbm %s2141_s8, 256 }
 0x873   :  { %p1786_p13 = scmp.ne.s32.totalorder %s2141_s8, %s1785_s19  ;;  %p1789_p0 = scmp.lt.u32.totalorder %s1785_s19, %s2141_s8 }
 0x875   :  { %p1791_p1 = pnand %p1789_p0, %p1786_p13 }
 0x877   :  { %1794 = shalt.err (!%p1791_p1)
}
 0x878   :  { %1222 = dma.vmem_to_hbm [thread:$0]  %s1217_s14, 256, %s2141_s8, [#allocation4], %s1800_s15, %s1800_s15, %s1801_s16  }
 0x879   :  { %1797 = dma.done.wait [#allocation4], 256  }
 0x87a   :  { %1798 = vsyncadd [#allocation4], 4294967040 }
 0x87b   :  { %1226 = vsyncpa [#allocation3], 1 }
 0x87c   :  { %1227 = vsyncpa [#allocation4], 1 }

</bundles_post_ra>
